<compile_context>
chip_gen: v7x
topology: tpu7x:2x2x1
jax: 0.10.0
libtpu: 0.0.40
codegen_flags: <defaults>
</compile_context>

<pallas_src>
import math

import jax
import jax.numpy as jnp
from jax.experimental import pallas as pl
from jax.experimental.pallas import tpu as pltpu

_SMALL_BYTES = 256 * 1024   # below this, kernel launch + DMA setup dominates -> skip kernel
_MAX_DMA_CHUNKS = 4         # max outstanding HBM->HBM DMAs


def _leading_dim_chunks(shape):
    """Static (start, size) chunks of the leading dim, or None for a single full-ref DMA."""
    if not shape or shape[0] < 2:
        return None
    dim0 = shape[0]
    n = min(_MAX_DMA_CHUNKS, dim0)
    base, rem = divmod(dim0, n)
    chunks, start = [], 0
    for i in range(n):
        size = base + (1 if i < rem else 0)
        chunks.append((start, size))
        start += size
    return chunks


def _make_hbm_copy_kernel(chunks):
    """Kernel issuing one HBM->HBM DMA per static chunk (all in flight, then wait all)."""
    n_sems = 1 if chunks is None else len(chunks)

    def kernel(x_hbm, o_hbm, sems):
        if chunks is None:
            copies = [pltpu.make_async_copy(x_hbm, o_hbm, sems.at[0])]
        else:
            copies = [
                pltpu.make_async_copy(
                    x_hbm.at[pl.ds(start, size)],
                    o_hbm.at[pl.ds(start, size)],
                    sems.at[i],
                )
                for i, (start, size) in enumerate(chunks)
            ]
        for cp in copies:          # issue all DMAs (up to _MAX_DMA_CHUNKS outstanding)
            cp.start()
        for cp in copies:          # block until every chunk has landed in the output
            cp.wait()

    return kernel, n_sems


def _pallas_hbm_copy(x, *, force_kernel=False):
    """Materialize a copy of `x` via a Pallas HBM->HBM DMA kernel (no VMEM staging)."""
    total = math.prod(x.shape) if x.shape else 1
    nbytes = total * jnp.dtype(x.dtype).itemsize
    if total == 0:
        return x                                  # nothing to copy; avoid a zero-sized kernel
    if not force_kernel and nbytes < _SMALL_BYTES:
        return x                                  # launch overhead would dominate the copy

    chunks = _leading_dim_chunks(x.shape)
    kernel, n_sems = _make_hbm_copy_kernel(chunks)
    return pl.pallas_call(
        kernel,
        out_shape=jax.ShapeDtypeStruct(x.shape, x.dtype),
        in_specs=[pl.BlockSpec(memory_space=pl.ANY)],    # raw HBM ref, no auto-DMA
        out_specs=pl.BlockSpec(memory_space=pl.ANY),     # raw HBM ref, written via DMA
        scratch_shapes=[pltpu.SemaphoreType.DMA((n_sems,))],
    )(x)


def annotate_module_forward(x: jax.Array, *, materialize_copy: bool = False,
                            force_kernel: bool = False) -> jax.Array:
    """Forward pass of AnnotateModule.

    Annotator([0]) marks dim 0 as dynamic at trace time only; the runtime
    semantics are `forward(x) == x`.  The default path is therefore the true
    identity (zero HBM traffic).  Set `materialize_copy=True` to force an
    explicit copy through the Pallas HBM->HBM DMA kernel.
    """
    if not materialize_copy:
        return x
    return _pallas_hbm_copy(x, force_kernel=force_kernel)


if __name__ == "__main__":
    key = jax.random.PRNGKey(0)
    k1, k2, k3 = jax.random.split(key, 3)

    # 1) Default path: true identity short-circuit (zero HBM traffic).
    x = jax.random.normal(k1, (2, 4, 16, 16), dtype=jnp.float32)
    y = jax.block_until_ready(annotate_module_forward(x))
    assert y.shape == x.shape and y.dtype == x.dtype
    assert bool(jnp.all(y == x))

    # 2) Materialized-copy path on the module's original shape (1, 3, 224, 224):
    #    native-shape HBM->HBM DMA kernel (no reshape/pad, no VMEM staging).
    x_big = jax.random.normal(k2, (1, 3, 224, 224), dtype=jnp.float32)
    y_big = jax.block_until_ready(annotate_module_forward(x_big, materialize_copy=True))
    assert y_big.shape == x_big.shape and y_big.dtype == x_big.dtype
    assert bool(jnp.all(y_big == x_big))

    # 3) Awkward small shape, forced through the kernel (multi-chunk DMA path).
    x_odd = jax.random.normal(k3, (2, 3, 5, 7), dtype=jnp.float32)
    y_odd = jax.block_until_ready(
        annotate_module_forward(x_odd, materialize_copy=True, force_kernel=True))
    assert y_odd.shape == x_odd.shape and bool(jnp.all(y_odd == x_odd))

    # 4) Zero-sized input no longer crashes.
    x_empty = jnp.zeros((0, 3, 8, 8), dtype=jnp.float32)
    y_empty = jax.block_until_ready(annotate_module_forward(x_empty, materialize_copy=True))
    assert y_empty.shape == x_empty.shape

    print("KERNEL_OK")
</pallas_src>

<mosaic_0001>
module attributes {stable_mosaic.version = 11 : i64} {
  func.func @kernel(%arg0: memref<1x3x224x224xf32, #tpu.memory_space<any>>, %arg1: memref<1x3x224x224xf32, #tpu.memory_space<any>>, %arg2: memref<1x!tpu.dma_semaphore, #tpu.memory_space<semaphore_mem>>) attributes {dimension_semantics = [], scalar_prefetch = 0 : i64, scratch_operands = 1 : i64, tpu.core_type = #tpu.core_type<tc>} {
    %c0_i32 = arith.constant 0 : i32
    %0 = tpu.memref_slice %arg2[%c0_i32] : memref<1x!tpu.dma_semaphore, #tpu.memory_space<semaphore_mem>> -> memref<1x!tpu.dma_semaphore, #tpu.memory_space<semaphore_mem>>
    %1 = tpu.memref_squeeze %0 : memref<1x!tpu.dma_semaphore, #tpu.memory_space<semaphore_mem>> -> memref<!tpu.dma_semaphore, #tpu.memory_space<semaphore_mem>>
    tpu.enqueue_dma source(%arg0 : memref<1x3x224x224xf32, #tpu.memory_space<any>>) target(%arg1 : memref<1x3x224x224xf32, #tpu.memory_space<any>>) target_semaphore(%1 : memref<!tpu.dma_semaphore, #tpu.memory_space<semaphore_mem>>)
    %c0_i32_0 = arith.constant 0 : i32
    %2 = tpu.memref_slice %arg2[%c0_i32_0] : memref<1x!tpu.dma_semaphore, #tpu.memory_space<semaphore_mem>> -> memref<1x!tpu.dma_semaphore, #tpu.memory_space<semaphore_mem>>
    %3 = tpu.memref_squeeze %2 : memref<1x!tpu.dma_semaphore, #tpu.memory_space<semaphore_mem>> -> memref<!tpu.dma_semaphore, #tpu.memory_space<semaphore_mem>>
    tpu.wait_dma2 semaphore(%3 : memref<!tpu.dma_semaphore, #tpu.memory_space<semaphore_mem>>) src(%arg0 : memref<1x3x224x224xf32, #tpu.memory_space<any>>) dst(%arg1 : memref<1x3x224x224xf32, #tpu.memory_space<any>>)
    return
  }
}

</mosaic_0001>

<bundles_post_ra>
// kernel: tpu_custom_call.1
= control target key start
LH: loop header
LB: loop body
LE: loop exit
PB: predicated region body
PF: predicated region fallthrough
CT: control target
= control target key end

     0   :  { %s37_s6 = smov [#allocation2]   ;;  %s38_s7 = smov [#allocation3]   ;;  %s56_s0 = inlined_call_operand.hbm [shape: f32[1,3,224,224], index: 0, kind: input, shape index: {}]   ;;  %s57_s1 = inlined_call_operand.hbm [shape: f32[1,3,224,224], index: 1, kind: output, shape index: {}]  }
   0x1   :  { %s39_s8 = smov 0  }
   0x2   :  { %18 = dma.general %s56_s0, 21504, %s57_s1, %s37_s6, %s38_s7, [#allocation4], %s39_s8, 0  }
   0x3   :  { %35 = dma.done.wait [#allocation2], 21504 }
   0x4   :  { %36 = vsyncadd [#allocation2], 4294945792 }
   0x5   :  { %25 = vsyncmov [#allocation2] }
   0x8   :  { %s26_s13 = vpop.sfrf %25 }
   0x9   :  { %p31_p0 = scmp.ne.s32.totalorder %s26_s13, 0 }
   0xb   :  { %30 = shalt.err (%p31_p0)  }

</bundles_post_ra>
